<compile_context>
chip_gen: v6e
topology: v6e:2x2x1
jax: 0.10.0
libtpu: 0.0.40
codegen_flags: <defaults>
</compile_context>

<pallas_src>
import jax
import jax.numpy as jnp
from jax.experimental import pallas as pl
from jax.experimental.pallas import tpu as pltpu

_LANE = 128                        # lane width (output N tile granularity)
_VMEM_BUDGET = 24 * 1024 * 1024    # conservative vs 32 MiB scoped default


def _round_up(x, m):
    return ((x + m - 1) // m) * m


def _sublane(dtype):
    # second-to-last-dim packing granularity: f32 -> 8, bf16 -> 16, int8 -> 32
    return 8 * (4 // jnp.dtype(dtype).itemsize)


# --------------------------------------------------------------------------- #
# Kernels
# --------------------------------------------------------------------------- #
def _linear_kernel(x_ref, wt_ref, b_ref, o_ref):
    # x: (TM, E)  wt: (E, Cp)  b: (1, Cp)  o: (TM, Cp)
    # Contraction is x's last dim against wt's first dim -> feeds the MXU
    # directly, no transpose inside the kernel.
    acc = jnp.dot(x_ref[...], wt_ref[...], preferred_element_type=jnp.float32)
    o_ref[...] = (acc + b_ref[...]).astype(o_ref.dtype)


def _linear_kernel_ktiled(x_ref, wt_ref, b_ref, o_ref, acc_ref):
    # K-tiled variant for very large embed_dim (P3 accumulator pattern).
    k = pl.program_id(1)

    @pl.when(k == 0)
    def _():
        acc_ref[...] = jnp.zeros_like(acc_ref)

    acc_ref[...] += jnp.dot(x_ref[...], wt_ref[...],
                            preferred_element_type=jnp.float32)

    @pl.when(k == pl.num_programs(1) - 1)
    def _():
        o_ref[...] = (acc_ref[...] + b_ref[...]).astype(o_ref.dtype)


# --------------------------------------------------------------------------- #
# Tiling heuristics
# --------------------------------------------------------------------------- #
def _pick_tiles(B, E, Cp, in_itemsize, out_itemsize, sub):
    """Returns (TM, TK, Bp). TK == E means no K split; Bp == B means no padding."""
    # Contraction tile: split E only when a full-width activation row would
    # dominate the VMEM budget at a reasonable TM.
    TK = E
    if E * in_itemsize > 32 * 1024:
        for cand in range(8192, 511, -512):
            if E % cand == 0:
                TK = cand
                break
    k_tiled = TK != E

    if k_tiled:
        fixed = 2 * TK * Cp * in_itemsize + Cp * 4                 # w tiles (dbuf) + bias
        per_row = 2 * TK * in_itemsize + 2 * Cp * out_itemsize + Cp * 4  # x, out, f32 acc
    else:
        fixed = TK * Cp * in_itemsize + Cp * 4                     # resident 1-buf weight + bias
        per_row = 2 * TK * in_itemsize + 2 * Cp * out_itemsize     # x dbuf + out dbuf

    cap = max(sub, (_VMEM_BUDGET - fixed) // max(per_row, 1))
    cap = min(cap, 1024)
    cap = max(sub, (cap // sub) * sub)

    B_r = _round_up(B, sub)
    target = min(B_r, cap)
    # >=2 batch tiles whenever possible so v7x's two TensorCores both get work.
    if B_r <= cap and B_r >= 2 * sub:
        target = min(target, _round_up(-(-B_r // 2), sub))

    # Prefer a TM that divides B exactly: no wrapper-side activation re-pad.
    for tm in range(target, 0, -sub):
        if B % tm == 0:
            return tm, TK, B
    # Ragged fallback: pad only the tail tile.
    return target, TK, _round_up(B, target)


# --------------------------------------------------------------------------- #
# Parameter prep (run ONCE at parameter-load time)
# --------------------------------------------------------------------------- #
def prepare_classifier_params(weight, bias, *, low_precision=False):
    """weight: (C, E) PyTorch nn.Linear layout; bias: (C,).

    Returns (w_t, b2d): weight transposed to (E, Cp) with the class dim
    zero-padded to a lane multiple, and bias as a (1, Cp) f32 row.
    """
    C, E = weight.shape
    assert bias.shape == (C,)
    compute_dtype = jnp.bfloat16 if low_precision else weight.dtype
    Cp = _round_up(max(C, _LANE), _LANE)
    w_t = jnp.zeros((E, Cp), dtype=compute_dtype).at[:, :C].set(
        weight.T.astype(compute_dtype))
    b2d = jnp.zeros((1, Cp), dtype=jnp.float32).at[0, :C].set(
        bias.astype(jnp.float32))
    return w_t, b2d


# --------------------------------------------------------------------------- #
# Forward
# --------------------------------------------------------------------------- #
def classifier_apply(status, w_t, b2d, num_class, *, force_pallas=False):
    """status: (B, E); w_t: (E, Cp); b2d: (1, Cp) -> (B, num_class)."""
    B, E = status.shape
    E2, Cp = w_t.shape
    assert E == E2 and Cp % _LANE == 0 and num_class <= Cp
    out_dtype = status.dtype
    x = status if status.dtype == w_t.dtype else status.astype(w_t.dtype)

    # Tiny problems are fixed-overhead bound as a standalone kernel: let XLA
    # fuse them. The Pallas path targets the large-B serving case.
    if not force_pallas and B * E < 64 * 1024:
        out = jnp.dot(x, w_t, preferred_element_type=jnp.float32) + b2d
        return out[:B, :num_class].astype(out_dtype)

    sub = _sublane(x.dtype)
    TM, TK, Bp = _pick_tiles(B, E, Cp, jnp.dtype(x.dtype).itemsize,
                             jnp.dtype(out_dtype).itemsize, sub)
    if Bp != B:
        # Ragged-tail fallback only (TM divides B exactly whenever possible).
        x = jnp.zeros((Bp, E), dtype=x.dtype).at[:B, :].set(x)

    if TK == E:
        out = pl.pallas_call(
            _linear_kernel,
            out_shape=jax.ShapeDtypeStruct((Bp, Cp), out_dtype),
            grid_spec=pltpu.PrefetchScalarGridSpec(
                num_scalar_prefetch=0,
                grid=(Bp // TM,),
                in_specs=[
                    # activation: tiled over batch, double-buffered by Pallas
                    pl.BlockSpec((TM, E), lambda i: (i, 0)),
                    # weight/bias: resident, constant index_map -> single buffer
                    pl.BlockSpec((E, Cp), lambda i: (0, 0),
                                 pipeline_mode=pl.Buffered(1)),
                    pl.BlockSpec((1, Cp), lambda i: (0, 0),
                                 pipeline_mode=pl.Buffered(1)),
                ],
                out_specs=pl.BlockSpec((TM, Cp), lambda i: (i, 0)),
            ),
            compiler_params=pltpu.CompilerParams(
                dimension_semantics=("parallel",)),
        )(x, w_t, b2d)
    else:
        out = pl.pallas_call(
            _linear_kernel_ktiled,
            out_shape=jax.ShapeDtypeStruct((Bp, Cp), out_dtype),
            grid_spec=pltpu.PrefetchScalarGridSpec(
                num_scalar_prefetch=0,
                grid=(Bp // TM, E // TK),
                in_specs=[
                    pl.BlockSpec((TM, TK), lambda i, k: (i, k)),
                    pl.BlockSpec((TK, Cp), lambda i, k: (k, 0)),
                    pl.BlockSpec((1, Cp), lambda i, k: (0, 0),
                                 pipeline_mode=pl.Buffered(1)),
                ],
                out_specs=pl.BlockSpec((TM, Cp), lambda i, k: (i, 0)),
                scratch_shapes=[pltpu.VMEM((TM, Cp), jnp.float32)],
            ),
            compiler_params=pltpu.CompilerParams(
                dimension_semantics=("parallel", "arbitrary")),
        )(x, w_t, b2d)

    return out[:B, :num_class]


def classifier_forward(status, weight, bias, *, force_pallas=False,
                       low_precision=False):
    """Convenience wrapper taking raw PyTorch-layout parameters."""
    w_t, b2d = prepare_classifier_params(weight, bias,
                                         low_precision=low_precision)
    return classifier_apply(status, w_t, b2d, weight.shape[0],
                            force_pallas=force_pallas)


if __name__ == "__main__":
    # Small shapes consistent with the module: embed_dim=32, num_class=4, batch=8
    batch, embed_dim, num_class = 8, 32, 4

    key = jax.random.PRNGKey(0)
    k_x, k_w = jax.random.split(key)

    status = jax.random.normal(k_x, (batch, embed_dim), dtype=jnp.float32)

    # Deterministic init mimicking init_weights(): weight ~ U(-0.5, 0.5), bias = 0
    initrange = 0.5
    weight = jax.random.uniform(
        k_w, (num_class, embed_dim), dtype=jnp.float32,
        minval=-initrange, maxval=initrange)
    bias = jnp.zeros((num_class,), dtype=jnp.float32)

    # Parameter layout prep done once (hoisted out of the per-call path).
    w_t, b2d = prepare_classifier_params(weight, bias)

    # Force the Pallas path at this demo size (normally gated behind a size
    # threshold where plain XLA fusion wins).
    out = classifier_apply(status, w_t, b2d, num_class, force_pallas=True)
    out = jax.block_until_ready(out)

    # Reference check against plain JAX linear (PyTorch semantics: x @ W.T + b)
    ref = status @ weight.T + bias
    assert out.shape == (batch, num_class)
    assert jnp.allclose(out, ref, atol=1e-5, rtol=1e-5)

    print("KERNEL_OK")
</pallas_src>

<mosaic_0001>
module attributes {stable_mosaic.version = 11 : i64} {
  func.func @_linear_kernel(%arg0: i32, %arg1: memref<8x32xf32, #tpu.memory_space<vmem>>, %arg2: memref<32x128xf32, #tpu.memory_space<vmem>>, %arg3: memref<1x128xf32, #tpu.memory_space<vmem>>, %arg4: memref<8x128xf32, #tpu.memory_space<vmem>>) attributes {dimension_semantics = [#tpu.dimension_semantics<parallel>], iteration_bounds = array<i64: 1>, scalar_prefetch = 0 : i64, scratch_operands = 0 : i64, tpu.core_type = #tpu.core_type<tc>, window_params = [{transform_indices = @transform_0, window_bounds = array<i64: 8, 32>}, {pipeline_mode = #tpu.pipeline_mode<synchronous>, transform_indices = @transform_1, window_bounds = array<i64: 32, 128>}, {pipeline_mode = #tpu.pipeline_mode<synchronous>, transform_indices = @transform_2, window_bounds = array<i64: 1, 128>}, {transform_indices = @transform_3, window_bounds = array<i64: 8, 128>}]} {
    %c0 = arith.constant 0 : index
    %c0_0 = arith.constant 0 : index
    %0 = vector.load %arg1[%c0, %c0_0] : memref<8x32xf32, #tpu.memory_space<vmem>>, vector<8x32xf32>
    %c0_1 = arith.constant 0 : index
    %c0_2 = arith.constant 0 : index
    %1 = vector.load %arg2[%c0_1, %c0_2] : memref<32x128xf32, #tpu.memory_space<vmem>>, vector<32x128xf32>
    %cst = arith.constant dense<0.000000e+00> : vector<8x128xf32>
    %2 = tpu.matmul %0, %1, %cst {dimension_numbers = #tpu.dot_dimension_numbers<[1], [0], [0], [1], [0, 0, 1, 1], [], []>} : vector<8x32xf32>, vector<32x128xf32>, vector<8x128xf32> -> vector<8x128xf32>
    %c0_3 = arith.constant 0 : index
    %c0_4 = arith.constant 0 : index
    %3 = vector.load %arg3[%c0_3, %c0_4] : memref<1x128xf32, #tpu.memory_space<vmem>>, vector<1x128xf32>
    %4 = vector.broadcast %3 : vector<1x128xf32> to vector<8x128xf32>
    %5 = arith.addf %2, %4 : vector<8x128xf32>
    %c0_5 = arith.constant 0 : index
    %c0_6 = arith.constant 0 : index
    %6 = vector.load %arg4[%c0_5, %c0_6] : memref<8x128xf32, #tpu.memory_space<vmem>>, vector<8x128xf32>
    tpu.vector_store %arg4[%c0_5, %c0_6], %5 {strides = array<i32>} : memref<8x128xf32, #tpu.memory_space<vmem>>, vector<8x128xf32>,
    return
  }
  func.func @transform_0(%arg0: i32) -> (i32, i32) {
    %c0_i32 = arith.constant 0 : i32
    %c0_i32_0 = arith.constant 0 : i32
    return %arg0, %c0_i32 : i32, i32
  }
  func.func @transform_1(%arg0: i32) -> (i32, i32) {
    %c0_i32 = arith.constant 0 : i32
    %c0_i32_0 = arith.constant 0 : i32
    %c0_i32_1 = arith.constant 0 : i32
    return %c0_i32, %c0_i32_0 : i32, i32
  }
  func.func @transform_2(%arg0: i32) -> (i32, i32) {
    %c0_i32 = arith.constant 0 : i32
    %c0_i32_0 = arith.constant 0 : i32
    %c0_i32_1 = arith.constant 0 : i32
    return %c0_i32, %c0_i32_0 : i32, i32
  }
  func.func @transform_3(%arg0: i32) -> (i32, i32) {
    %c0_i32 = arith.constant 0 : i32
    %c0_i32_0 = arith.constant 0 : i32
    return %arg0, %c0_i32 : i32, i32
  }
}

</mosaic_0001>

<bundles_post_ra>
// kernel: tpu_custom_call.1
= control target key start
LH: loop header
LB: loop body
LE: loop exit
PB: predicated region body
PF: predicated region fallthrough
CT: control target
= control target key end

     0   :  { %8 = vsyncpa [#allocation3], 0  ;;  %s274_s0 = inlined_call_operand.hbm [shape: f32[8,32], index: 0, kind: input, shape index: {}]   ;;  %s275_s1 = inlined_call_operand.hbm [shape: f32[32,128], index: 1, kind: input, shape index: {}]   ;;  %s276_s2 = inlined_call_operand.vmem [shape: f32[1,128], index: 2, kind: input, shape index: {}]   ;;  %s277_s3 = inlined_call_operand.hbm [shape: f32[8,128], index: 3, kind: output, shape index: {}]  }
   0x1   :  { %9 = vsyncpa [#allocation6], 0 }
   0x2   :  { %10 = vsyncpa [#allocation4], 0  ;;  %s235_s12 = smov [#allocation2]   ;;  %s236_s14 = smov [#allocation5]  }
   0x3   :  { %s17_s13 = sshll.u32 %s235_s12, 4  ;;  %s26_s15 = sshll.u32 %s236_s14, 4  ;;  %s18_s13 = int_to_ptr.vmem [resolvable:$true] %s17_s13  ;;  %s27_s15 = int_to_ptr.vmem [resolvable:$true] %s26_s15 }
   0x4   :  { %s177_s16 = scalar_lea.vmem %s18_s13, 128  ;;  %p182_p1 = scmp.lt.s32.totalorder %s18_s13, %s18_s13 }
   0x5   :  { %p178_p0 = scmp.ne.s32.totalorder %s18_s13, %s177_s16  ;;  %p183_p2 = scmp.lt.s32.totalorder %s177_s16, %s177_s16 }
   0x7   :  { %p184_p3 = por %p183_p2, %p182_p1 }
   0x9   :  { %p185_p4 = pnand %p184_p3, %p178_p0 }
   0xb   :  { %188 = shalt.err (!%p185_p4)
}
   0xc   :  { %20 = dma.hbm_to_vmem [thread:$0]  %s274_s0, 128, %s18_s13, [#allocation3]  }
   0xd   :  { %s197_s19 = scalar_lea.vmem %s27_s15, 512  ;;  %p202_p6 = scmp.lt.s32.totalorder %s27_s15, %s27_s15 }
   0xe   :  { %p198_p5 = scmp.ne.s32.totalorder %s27_s15, %s197_s19  ;;  %p203_p7 = scmp.lt.s32.totalorder %s197_s19, %s197_s19 }
  0x10   :  { %p204_p8 = por %p203_p7, %p202_p6 }
  0x12   :  { %p205_p9 = pnand %p204_p8, %p198_p5 }
  0x14   :  { %208 = shalt.err (!%p205_p9)
}
  0x15   :  { %s237_s20 = smov 128   ;;  %s238_s21 = smov 8  }
  0x16   :  { %32 = dma.hbm_to_vmem [thread:$0]  %s275_s1, 512, %s27_s15, [#allocation6], %s237_s20, %s237_s20, %s238_s21  }
  0x17   :  { %229 = dma.done.wait [#allocation3], 128  }
  0x18   :  { %230 = vsyncadd [#allocation3], 4294967168 }
  0x19   :  { %231 = dma.done.wait [#allocation6], 512  }
  0x1a   :  { %232 = vsyncadd [#allocation6], 4294966784  ;;  %v239_v0 = vmov 0.0   ;;  %vm240_vm0 = vmmov 0   ;;  %v45_v1 = vld [vmem:[#allocation5 + $0x18] sm:$0xff]  ;;  %v44_v2 = vld [vmem:[#allocation5 + $0x10] sm:$0xff] }
  0x1b   :  { %151 = vmatprep.subr.mxu0 %v239_v0  ;;  %159 = vmatprep.mubr.msk.f32.mxu0 %vm240_vm0, %v239_v0  ;;  %v43_v3 = vld [vmem:[#allocation5 + $0x8] sm:$0xff]  ;;  %v42_v4 = vld [vmem:[#allocation5] sm:$0xff]  ;;  %v41_v5 = vld [vmem:[#allocation2] sm:$0xff]  ;;  %vm53_vm1 = vcmask 261120   ;;  %s241_s24 = smov [#allocation7]  }
  0x1c   :  { %152 = vmatpush3.msra.mxu0 %v45_v1  ;;  %v144_v6 = vld [vmem:[%s276_s2] ss:$0 sm:$0xff]  ;;  %s134_s25 = sshll.u32 %s241_s24, 4  ;;  %s135_s25 = int_to_ptr.vmem [resolvable:$true] %s134_s25 }
  0x1d   :  { %153 = vmatprep.subr.mxu0 %v239_v0  ;;  %s209_s26 = scalar_lea.vmem %s135_s25, 128  ;;  %p214_p11 = scmp.lt.s32.totalorder %s135_s25, %s135_s25 }
  0x1e   :  { %154 = vmatpush3.msra.mxu0 %v44_v2  ;;  %p210_p10 = scmp.ne.s32.totalorder %s135_s25, %s209_s26  ;;  %p215_p12 = scmp.lt.s32.totalorder %s209_s26, %s209_s26 }
  0x1f   :  { %155 = vmatprep.subr.mxu0 %v239_v0 }
  0x20   :  { %156 = vmatpush3.msra.mxu0 %v43_v3  ;;  %p216_p13 = por %p215_p12, %p214_p11 }
  0x21   :  { %157 = vmatprep.subr.mxu0 %v239_v0 }
  0x22   :  { %158 = vmatpush3.msra.mxu0 %v42_v4  ;;  %p217_p0 = pnand %p216_p13, %p210_p10 }
  0x23   :  { %160 = vmatmul.mubr.msk.f32.vlgmr.msra.gmra.mxu0 %vm53_vm1, %v41_v5 }
  0xe3   :  { %v123_v7 = vpop.f32.mrf.mxu0 }
  0xe4   :  { %v124_v8 = vadd.f32 %v144_v6, %v123_v7 }
  0xe5   :  { %v161_v9 = vpop.f32.mrf.mxu0 }
  0xe6   :  { %127 = vst [vmem:[#allocation7] sm:$0xff] %v124_v8 }
  0xe7   :  { %220 = shalt.err (!%p217_p0)
}
  0xe8   :  { %137 = dma.vmem_to_hbm [thread:$0]  %s135_s25, 128, %s277_s3, [#allocation4]  }
  0xe9   :  { %233 = dma.done.wait [#allocation4], 128  }
  0xea   :  { %234 = vsyncadd [#allocation4], 4294967168 }
  0xeb   :  { %141 = vsyncpa [#allocation3], 1 }
  0xec   :  { %142 = vsyncpa [#allocation6], 1 }
  0xed   :  { %143 = vsyncpa [#allocation4], 1 }

</bundles_post_ra>
